<compile_context>
chip_gen: v6e
topology: v6e:2x2x1
jax: 0.10.0
libtpu: 0.0.40
codegen_flags: <defaults>
</compile_context>

<pallas_src>
import jax
import jax.numpy as jnp
from jax.experimental import pallas as pl
from jax.experimental.pallas import tpu as pltpu


def _beta_kernel(rho_ref, delta_ref, lbs_ref, lsr_ref, lsd_ref):
    # log_softmax(rho): stage the max-shifted values in the output ref so the
    # output VMEM buffer doubles as the temporary (fewer full-tile temps).
    rho = rho_ref[...].astype(jnp.float32)
    lsr_ref[...] = rho - jnp.max(rho, axis=-1, keepdims=True)
    s_r = lsr_ref[...]
    lsr_ref[...] = s_r - jnp.log(jnp.sum(jnp.exp(s_r), axis=-1, keepdims=True))

    # log_softmax(delta): same staging trick.
    delta = delta_ref[...].astype(jnp.float32)
    lsd_ref[...] = delta - jnp.max(delta, axis=-1, keepdims=True)
    s_d = lsd_ref[...]
    lsd_ref[...] = s_d - jnp.log(jnp.sum(jnp.exp(s_d), axis=-1, keepdims=True))

    # log_beta_spliced = log_softmax_rho + log_softmax_delta
    lbs_ref[...] = lsr_ref[...] + lsd_ref[...]


def total_delta_etm_decoder(rho, delta, z, *, tm=32):
    """Pallas implementation of TotalDeltaETMDecoder.forward(z)."""
    n_input, n_output = rho.shape

    # Row tile: multiple of 8, no bigger than the 8-rounded row count, and
    # shrunk so (5 arrays x 2 pipeline buffers + ~2 full-tile temporaries)
    # stays under ~40 MiB -> safe on v7x's 64 MiB physical VMEM per TC.
    tm = max(8, min(int(tm), pl.cdiv(n_input, 8) * 8))
    tm -= tm % 8
    vmem_budget = 40 * 1024 * 1024
    while tm > 8 and 12 * tm * n_output * 4 > vmem_budget:
        tm //= 2
    # TODO(synk): for very wide outputs (n_output >~ 50k genes) add a column
    # grid axis ("arbitrary", last) with a two-pass/online softmax to keep the
    # VMEM working set bounded instead of holding full rows per block.

    grid = (pl.cdiv(n_input, tm),)  # ragged last tile is masked by Pallas
    row_spec = pl.BlockSpec((tm, n_output), lambda i: (i, 0))
    out_sds = jax.ShapeDtypeStruct((n_input, n_output), jnp.float32)

    lbs, lsr, lsd = pl.pallas_call(
        _beta_kernel,
        out_shape=(out_sds, out_sds, out_sds),
        grid=grid,
        in_specs=[row_spec, row_spec],
        out_specs=(row_spec, row_spec, row_spec),
        compiler_params=pltpu.CompilerParams(
            dimension_semantics=("parallel",),      # megacore split on v7x
            vmem_limit_bytes=48 * 1024 * 1024,      # covers v5e's 16 MiB default
        ),
    )(rho.astype(jnp.float32), delta.astype(jnp.float32))

    # hh = exp(log_softmax(z)) = softmax(z): tiny (batch x n_input) epilogue.
    # A dedicated pallas_call costs more in launch/pipeline overhead than the
    # op itself, so it stays in plain JAX (per perf review).
    hh = jnp.exp(jax.nn.log_softmax(z.astype(jnp.float32), axis=-1))

    # log_beta_unspliced == log_softmax_rho (bit-identical): reuse the array
    # instead of paying a redundant full-size HBM write in the kernel.
    return lbs, lsr, hh, lsr, lsd


if __name__ == "__main__":
    # Small shapes consistent with the module docstring example:
    # n_input=10 latent variables, n_output=100 genes, batch=2.
    n_input, n_output, batch = 10, 100, 2

    key = jax.random.PRNGKey(0)
    k_rho, k_delta, k_z = jax.random.split(key, 3)

    # Deterministic "parameters" (stand-in for torch.randn init).
    rho = jax.random.normal(k_rho, (n_input, n_output), dtype=jnp.float32)
    delta = jax.random.normal(k_delta, (n_input, n_output), dtype=jnp.float32)
    z = jax.random.normal(k_z, (batch, n_input), dtype=jnp.float32)

    fwd = jax.jit(total_delta_etm_decoder)
    outs = jax.block_until_ready(fwd(rho, delta, z))
    log_beta_spliced, log_beta_unspliced, hh, lsr, lsd = outs

    # Pure-JAX reference check.
    ref_lsr = jax.nn.log_softmax(rho, axis=-1)
    ref_lsd = jax.nn.log_softmax(delta, axis=-1)
    ref_lbs = ref_lsr + ref_lsd
    ref_hh = jnp.exp(jax.nn.log_softmax(z, axis=-1))

    assert jnp.allclose(lsr, ref_lsr, atol=1e-5, rtol=1e-5)
    assert jnp.allclose(lsd, ref_lsd, atol=1e-5, rtol=1e-5)
    assert jnp.allclose(log_beta_spliced, ref_lbs, atol=1e-5, rtol=1e-5)
    assert jnp.allclose(log_beta_unspliced, ref_lsr, atol=1e-5, rtol=1e-5)
    assert jnp.allclose(hh, ref_hh, atol=1e-5, rtol=1e-5)

    print("KERNEL_OK")
</pallas_src>

<mosaic_0001>
module attributes {stable_mosaic.version = 11 : i64} {
  func.func @_beta_kernel(%arg0: i32, %arg1: memref<16x100xf32, #tpu.memory_space<vmem>>, %arg2: memref<16x100xf32, #tpu.memory_space<vmem>>, %arg3: memref<16x100xf32, #tpu.memory_space<vmem>>, %arg4: memref<16x100xf32, #tpu.memory_space<vmem>>, %arg5: memref<16x100xf32, #tpu.memory_space<vmem>>) attributes {dimension_semantics = [#tpu.dimension_semantics<parallel>], iteration_bounds = array<i64: 1>, scalar_prefetch = 0 : i64, scratch_operands = 0 : i64, tpu.core_type = #tpu.core_type<tc>, window_params = [{transform_indices = @transform_0, window_bounds = array<i64: 16, 100>}, {transform_indices = @transform_1, window_bounds = array<i64: 16, 100>}, {transform_indices = @transform_2, window_bounds = array<i64: 16, 100>}, {transform_indices = @transform_3, window_bounds = array<i64: 16, 100>}, {transform_indices = @transform_4, window_bounds = array<i64: 16, 100>}]} {
    %c0 = arith.constant 0 : index
    %c0_0 = arith.constant 0 : index
    %0 = vector.load %arg1[%c0, %c0_0] : memref<16x100xf32, #tpu.memory_space<vmem>>, vector<16x100xf32>
    %cst = arith.constant dense<0xFF800000> : vector<16xf32>
    %1 = vector.multi_reduction <maximumf>, %0, %cst [1] : vector<16x100xf32> to vector<16xf32>
    %2 = vector.shape_cast %1 : vector<16xf32> to vector<16x1xf32>
    %3 = vector.broadcast %2 : vector<16x1xf32> to vector<16x100xf32>
    %4 = arith.subf %0, %3 : vector<16x100xf32>
    %c0_1 = arith.constant 0 : index
    %c0_2 = arith.constant 0 : index
    %5 = vector.load %arg4[%c0_1, %c0_2] : memref<16x100xf32, #tpu.memory_space<vmem>>, vector<16x100xf32>
    tpu.vector_store %arg4[%c0_1, %c0_2], %4 {strides = array<i32>} : memref<16x100xf32, #tpu.memory_space<vmem>>, vector<16x100xf32>,
    %c0_3 = arith.constant 0 : index
    %c0_4 = arith.constant 0 : index
    %6 = vector.load %arg4[%c0_3, %c0_4] : memref<16x100xf32, #tpu.memory_space<vmem>>, vector<16x100xf32>
    %7 = math.exp %6 : vector<16x100xf32>
    %cst_5 = arith.constant dense<0.000000e+00> : vector<16xf32>
    %8 = vector.multi_reduction <add>, %7, %cst_5 [1] : vector<16x100xf32> to vector<16xf32>
    %9 = vector.shape_cast %8 : vector<16xf32> to vector<16x1xf32>
    %10 = math.log %9 : vector<16x1xf32>
    %11 = vector.broadcast %10 : vector<16x1xf32> to vector<16x100xf32>
    %12 = arith.subf %6, %11 : vector<16x100xf32>
    %c0_6 = arith.constant 0 : index
    %c0_7 = arith.constant 0 : index
    %13 = vector.load %arg4[%c0_6, %c0_7] : memref<16x100xf32, #tpu.memory_space<vmem>>, vector<16x100xf32>
    tpu.vector_store %arg4[%c0_6, %c0_7], %12 {strides = array<i32>} : memref<16x100xf32, #tpu.memory_space<vmem>>, vector<16x100xf32>,
    %c0_8 = arith.constant 0 : index
    %c0_9 = arith.constant 0 : index
    %14 = vector.load %arg2[%c0_8, %c0_9] : memref<16x100xf32, #tpu.memory_space<vmem>>, vector<16x100xf32>
    %cst_10 = arith.constant dense<0xFF800000> : vector<16xf32>
    %15 = vector.multi_reduction <maximumf>, %14, %cst_10 [1] : vector<16x100xf32> to vector<16xf32>
    %16 = vector.shape_cast %15 : vector<16xf32> to vector<16x1xf32>
    %17 = vector.broadcast %16 : vector<16x1xf32> to vector<16x100xf32>
    %18 = arith.subf %14, %17 : vector<16x100xf32>
    %c0_11 = arith.constant 0 : index
    %c0_12 = arith.constant 0 : index
    %19 = vector.load %arg5[%c0_11, %c0_12] : memref<16x100xf32, #tpu.memory_space<vmem>>, vector<16x100xf32>
    tpu.vector_store %arg5[%c0_11, %c0_12], %18 {strides = array<i32>} : memref<16x100xf32, #tpu.memory_space<vmem>>, vector<16x100xf32>,
    %c0_13 = arith.constant 0 : index
    %c0_14 = arith.constant 0 : index
    %20 = vector.load %arg5[%c0_13, %c0_14] : memref<16x100xf32, #tpu.memory_space<vmem>>, vector<16x100xf32>
    %21 = math.exp %20 : vector<16x100xf32>
    %cst_15 = arith.constant dense<0.000000e+00> : vector<16xf32>
    %22 = vector.multi_reduction <add>, %21, %cst_15 [1] : vector<16x100xf32> to vector<16xf32>
    %23 = vector.shape_cast %22 : vector<16xf32> to vector<16x1xf32>
    %24 = math.log %23 : vector<16x1xf32>
    %25 = vector.broadcast %24 : vector<16x1xf32> to vector<16x100xf32>
    %26 = arith.subf %20, %25 : vector<16x100xf32>
    %c0_16 = arith.constant 0 : index
    %c0_17 = arith.constant 0 : index
    %27 = vector.load %arg5[%c0_16, %c0_17] : memref<16x100xf32, #tpu.memory_space<vmem>>, vector<16x100xf32>
    tpu.vector_store %arg5[%c0_16, %c0_17], %26 {strides = array<i32>} : memref<16x100xf32, #tpu.memory_space<vmem>>, vector<16x100xf32>,
    %c0_18 = arith.constant 0 : index
    %c0_19 = arith.constant 0 : index
    %28 = vector.load %arg4[%c0_18, %c0_19] : memref<16x100xf32, #tpu.memory_space<vmem>>, vector<16x100xf32>
    %c0_20 = arith.constant 0 : index
    %c0_21 = arith.constant 0 : index
    %29 = vector.load %arg5[%c0_20, %c0_21] : memref<16x100xf32, #tpu.memory_space<vmem>>, vector<16x100xf32>
    %30 = arith.addf %28, %29 : vector<16x100xf32>
    %c0_22 = arith.constant 0 : index
    %c0_23 = arith.constant 0 : index
    %31 = vector.load %arg3[%c0_22, %c0_23] : memref<16x100xf32, #tpu.memory_space<vmem>>, vector<16x100xf32>
    tpu.vector_store %arg3[%c0_22, %c0_23], %30 {strides = array<i32>} : memref<16x100xf32, #tpu.memory_space<vmem>>, vector<16x100xf32>,
    return
  }
  func.func @transform_0(%arg0: i32) -> (i32, i32) {
    %c0_i32 = arith.constant 0 : i32
    %c0_i32_0 = arith.constant 0 : i32
    return %arg0, %c0_i32 : i32, i32
  }
  func.func @transform_1(%arg0: i32) -> (i32, i32) {
    %c0_i32 = arith.constant 0 : i32
    %c0_i32_0 = arith.constant 0 : i32
    return %arg0, %c0_i32 : i32, i32
  }
  func.func @transform_2(%arg0: i32) -> (i32, i32) {
    %c0_i32 = arith.constant 0 : i32
    %c0_i32_0 = arith.constant 0 : i32
    return %arg0, %c0_i32 : i32, i32
  }
  func.func @transform_3(%arg0: i32) -> (i32, i32) {
    %c0_i32 = arith.constant 0 : i32
    %c0_i32_0 = arith.constant 0 : i32
    return %arg0, %c0_i32 : i32, i32
  }
  func.func @transform_4(%arg0: i32) -> (i32, i32) {
    %c0_i32 = arith.constant 0 : i32
    %c0_i32_0 = arith.constant 0 : i32
    return %arg0, %c0_i32 : i32, i32
  }
}

</mosaic_0001>

<bundles_post_ra>
// kernel: total_delta_etm_decoder.1
= control target key start
LH: loop header
LB: loop body
LE: loop exit
PB: predicated region body
PF: predicated region fallthrough
CT: control target
= control target key end

     0   :  { %10 = vsyncpa [#allocation3], 0  ;;  %s323_s0 = inlined_call_operand.hbm [shape: f32[10,100], index: 0, kind: input, shape index: {}]   ;;  %s324_s1 = inlined_call_operand.vmem [shape: f32[10,100], index: 1, kind: input, shape index: {}]   ;;  %s325_s2 = inlined_call_operand.hbm [shape: f32[10,100], index: 2, kind: output, shape index: {0}]   ;;  %s326_s3 = inlined_call_operand.vmem [shape: f32[10,100], index: 3, kind: output, shape index: {1}]   ;;  %s327_s4 = inlined_call_operand.hbm [shape: f32[10,100], index: 4, kind: output, shape index: {2}]  }
   0x1   :  { %11 = vsyncpa [#allocation4], 0 }
   0x2   :  { %12 = vsyncpa [#allocation7], 0  ;;  %s227_s15 = smov [#allocation2]  }
   0x3   :  { %s18_s16 = sshll.u32 %s227_s15, 4  ;;  %s19_s16 = int_to_ptr.vmem [resolvable:$true] %s18_s16 }
   0x4   :  { %s169_s17 = scalar_lea.vmem %s19_s16, 256  ;;  %p174_p1 = scmp.lt.s32.totalorder %s19_s16, %s19_s16 }
   0x5   :  { %p170_p0 = scmp.ne.s32.totalorder %s19_s16, %s169_s17  ;;  %p175_p2 = scmp.lt.s32.totalorder %s169_s17, %s169_s17 }
   0x7   :  { %p176_p3 = por %p175_p2, %p174_p1 }
   0x9   :  { %p177_p4 = pnand %p176_p3, %p170_p0 }
   0xb   :  { %180 = shalt.err (!%p177_p4)
}
   0xc   :  { %s228_s18 = smov 128   ;;  %s229_s19 = smov 8  }
   0xd   :  { %24 = dma.hbm_to_vmem [thread:$0]  %s323_s0, 256, %s19_s16, [#allocation3], %s228_s18, %s228_s18, %s229_s19  }
   0xe   :  { %221 = dma.done.wait [#allocation3], 256  }
   0xf   :  { %222 = vsyncadd [#allocation3], 4294967040  ;;  %vm32_vm0 = vcmask 818176   ;;  %v30_v0 = vld [vmem:[#allocation2] sm:$0xff]  ;;  %v31_v2 = vld [vmem:[#allocation2 + $0x8] sm:$0xff]  ;;  %s230_s8 = smov [#allocation6]  }
  0x10   :  { %v63_v1 = vld [vmem:[%s324_s1] sm:$0xff]  ;;  %v33_v3 = vsel %vm32_vm0, %v30_v0, -inf  ;;  %v64_v5 = vld [vmem:[%s324_s1 + $0x8] sm:$0xff]  ;;  %v36_v6 = vsel %vm32_vm0, %v31_v2, -inf  ;;  %s122_s9 = sshll.u32 %s230_s8, 4  ;;  %s123_s9 = int_to_ptr.vmem [resolvable:$true] %s122_s9 }
  0x11   :  { %v65_v4 = vsel %vm32_vm0, %v63_v1, -inf  ;;  %34 = vmax.xlane.f32.xlu0 %v33_v3  ;;  %v68_v7 = vsel %vm32_vm0, %v64_v5, -inf  ;;  %s181_s12 = scalar_lea.vmem %s123_s9, 256  ;;  %p186_p6 = scmp.lt.s32.totalorder %s123_s9, %s123_s9 }
  0x12   :  { %66 = vmax.xlane.f32.xlu1 %v65_v4  ;;  %p182_p5 = scmp.ne.s32.totalorder %s123_s9, %s181_s12  ;;  %p187_p7 = scmp.lt.s32.totalorder %s181_s12, %s181_s12 }
  0x14   :  { %p188_p8 = por %p187_p7, %p186_p6 }
  0x15   :  { %37 = vmax.xlane.f32.xlu0 %v36_v6 }
  0x16   :  { %69 = vmax.xlane.f32.xlu1 %v68_v7  ;;  %p189_p9 = pnand %p188_p8, %p182_p5 }
  0x9a   :  { %v35_v8 = vpop.xlane.xlu0 %34 }
  0x9b   :  { %v67_v9 = vpop.xlane.xlu1 %66  ;;  %v39_v10 = vsub.f32 %v30_v0, %v35_v8 }
  0x9c   :  { %v71_v11 = vsub.f32 %v63_v1, %v67_v9 }
  0x9d   :  { %41 = vst.msk [vmem:[%s326_s3] sm:$0xff] %vm32_vm0, %v39_v10 }
  0x9e   :  { %73 = vst.msk [vmem:[#allocation6] sm:$0xff] %vm32_vm0, %v71_v11  ;;  %v38_v12 = vpop.xlane.xlu0 %37 }
  0x9f   :  { %v70_v13 = vpop.xlane.xlu1 %69  ;;  %v40_v14 = vsub.f32 %v31_v2, %v38_v12 }
  0xa0   :  { %v72_v15 = vsub.f32 %v64_v5, %v70_v13 }
  0xa1   :  { %42 = vst.msk [vmem:[%s326_s3 + $0x8] sm:$0xff] %vm32_vm0, %v40_v14 }
  0xa2   :  { %74 = vst.msk [vmem:[#allocation6 + $0x8] sm:$0xff] %vm32_vm0, %v72_v15 }
  0xa4   :  { %v43_v16 = vld [vmem:[%s326_s3] sm:$0xff] }
  0xa5   :  { %v75_v17 = vld [vmem:[#allocation6] sm:$0xff]  ;;  %v45_v18 = vmul.f32 1.442695, %v43_v16 }
  0xa6   :  { %v77_v19 = vmul.f32 1.442695, %v75_v17 }
  0xa7   :  { %145 = vpow2.f32 %v45_v18 }
  0xa8   :  { %147 = vpow2.f32 %v77_v19  ;;  %v44_v20 = vld [vmem:[%s326_s3 + $0x8] sm:$0xff] }
  0xa9   :  { %v76_v21 = vld [vmem:[#allocation6 + $0x8] sm:$0xff]  ;;  %v47_v22 = vmul.f32 1.442695, %v44_v20 }
  0xaa   :  { %v79_v23 = vmul.f32 1.442695, %v76_v21 }
  0xab   :  { %149 = vpow2.f32 %v47_v22 }
  0xac   :  { %151 = vpow2.f32 %v79_v23 }
  0xb4   :  { %v146_v24 = vpop.eup %145 }
  0xb5   :  { %v148_v25 = vpop.eup %147  ;;  %v49_v26 = vsel %vm32_vm0, %v146_v24, 0.0 }
  0xb6   :  { %50 = vadd.xlane.f32.xlu0 %v49_v26  ;;  %v81_v27 = vsel %vm32_vm0, %v148_v25, 0.0 }
  0xb8   :  { %v150_v28 = vpop.eup %149 }
  0xb9   :  { %v152_v29 = vpop.eup %151  ;;  %v52_v30 = vsel %vm32_vm0, %v150_v28, 0.0 }
  0xba   :  { %82 = vadd.xlane.f32.xlu0 %v81_v27  ;;  %53 = vadd.xlane.f32.xlu1 %v52_v30  ;;  %v84_v31 = vsel %vm32_vm0, %v152_v29, 0.0 }
  0xbe   :  { %85 = vadd.xlane.f32.xlu1 %v84_v31 }
 0x13f   :  { %v51_v32 = vpop.xlane.xlu0 %50 }
 0x140   :  { %153 = vlog2.f32 %v51_v32 }
 0x143   :  { %v54_v33 = vpop.xlane.xlu1 %53  ;;  %v83_v34 = vpop.xlane.xlu0 %82 }
 0x144   :  { %155 = vlog2.f32 %v54_v33 }
 0x145   :  { %157 = vlog2.f32 %v83_v34 }
 0x147   :  { %v86_v35 = vpop.xlane.xlu1 %85 }
 0x148   :  { %159 = vlog2.f32 %v86_v35 }
 0x14d   :  { %v154_v36 = vpop.eup %153 }
 0x14e   :  { %v56_v37 = vmul.f32 0.6931472, %v154_v36 }
 0x150   :  { %v59_v38 = vsub.f32 %v43_v16, %v56_v37 }
 0x151   :  { %v156_v39 = vpop.eup %155 }
 0x152   :  { %v158_v40 = vpop.eup %157  ;;  %61 = vst.msk [vmem:[%s326_s3] sm:$0xff] %vm32_vm0, %v59_v38  ;;  %v58_v41 = vmul.f32 0.6931472, %v156_v39 }
 0x153   :  { %v88_v42 = vmul.f32 0.6931472, %v158_v40 }
 0x154   :  { %v60_v43 = vsub.f32 %v44_v20, %v58_v41 }
 0x155   :  { %v160_v44 = vpop.eup %159  ;;  %v91_v45 = vsub.f32 %v75_v17, %v88_v42 }
 0x156   :  { %62 = vst.msk [vmem:[%s326_s3 + $0x8] sm:$0xff] %vm32_vm0, %v60_v43  ;;  %v90_v46 = vmul.f32 0.6931472, %v160_v44 }
 0x157   :  { %93 = vst.msk [vmem:[#allocation6] sm:$0xff] %vm32_vm0, %v91_v45 }
 0x158   :  { %v92_v47 = vsub.f32 %v76_v21, %v90_v46 }
 0x15a   :  { %94 = vst.msk [vmem:[#allocation6 + $0x8] sm:$0xff] %vm32_vm0, %v92_v47 }
 0x15b   :  { %192 = shalt.err (!%p189_p9)
}
 0x15c   :  { %128 = dma.vmem_to_hbm [thread:$0]  %s123_s9, 256, %s327_s4, [#allocation7], %s228_s18, %s228_s18, %s229_s19  }
 0x15d   :  { %v95_v48 = vld [vmem:[%s326_s3] sm:$0xff]  ;;  %s231_s17 = smov [#allocation5]   ;;  %v96_v51 = vld [vmem:[%s326_s3 + $0x8] sm:$0xff] }
 0x15e   :  { %v97_v49 = vld [vmem:[#allocation6] sm:$0xff]  ;;  %s108_s20 = sshll.u32 %s231_s17, 4  ;;  %s109_s20 = int_to_ptr.vmem [resolvable:$true] %s108_s20 }
 0x15f   :  { %v99_v50 = vadd.f32 %v97_v49, %v95_v48  ;;  %s201_s4 = scalar_lea.vmem %s109_s20, 256  ;;  %p206_p11 = scmp.lt.s32.totalorder %s109_s20, %s109_s20 }
 0x160   :  { %p202_p10 = scmp.ne.s32.totalorder %s109_s20, %s201_s4  ;;  %p207_p12 = scmp.lt.s32.totalorder %s201_s4, %s201_s4 }
 0x161   :  { %v98_v52 = vld [vmem:[#allocation6 + $0x8] sm:$0xff]  ;;  %101 = vst.msk [vmem:[#allocation5] sm:$0xff] %vm32_vm0, %v99_v50 }
 0x162   :  { %v100_v53 = vadd.f32 %v98_v52, %v96_v51  ;;  %p208_p13 = por %p207_p12, %p206_p11 }
 0x164   :  { %102 = vst.msk [vmem:[#allocation5 + $0x8] sm:$0xff] %vm32_vm0, %v100_v53  ;;  %p209_p0 = pnand %p208_p13, %p202_p10 }
 0x166   :  { %212 = shalt.err (!%p209_p0)
}
 0x167   :  { %114 = dma.vmem_to_hbm [thread:$0]  %s109_s20, 256, %s325_s2, [#allocation4], %s228_s18, %s228_s18, %s229_s19  }
 0x168   :  { %223 = dma.done.wait [#allocation4], 256  }
 0x169   :  { %224 = vsyncadd [#allocation4], 4294967040 }
 0x16a   :  { %225 = dma.done.wait [#allocation7], 256  }
 0x16b   :  { %226 = vsyncadd [#allocation7], 4294967040 }
 0x16c   :  { %137 = vsyncpa [#allocation3], 1 }
 0x16d   :  { %138 = vsyncpa [#allocation4], 1 }
 0x16e   :  { %139 = vsyncpa [#allocation7], 1 }

</bundles_post_ra>
